<compile_context>
chip_gen: v7x
topology: tpu7x:2x2x1
jax: 0.10.0
libtpu: 0.0.40
codegen_flags: <defaults>
</compile_context>

<pallas_src>
import jax
import jax.numpy as jnp
from jax.experimental import pallas as pl
from jax.experimental.pallas import tpu as pltpu


def mlp_kernel(x_ref, w1_ref, b1_ref, w2_ref, b2_ref, o_ref):
    # Casts to bf16 happen in-kernel (cheap VPU work, hidden under DMA/MXU);
    # accumulation stays f32 via preferred_element_type.
    x = x_ref[...].astype(jnp.bfloat16)
    w1 = w1_ref[...].astype(jnp.bfloat16)
    h = jnp.dot(x, w1, preferred_element_type=jnp.float32)
    h = jnp.maximum(h + b1_ref[...], 0.0)                 # bias + ReLU in f32

    w2 = w2_ref[...].astype(jnp.bfloat16)
    y = jnp.dot(h.astype(jnp.bfloat16), w2, preferred_element_type=jnp.float32)
    o_ref[...] = (y + b2_ref[...]).astype(o_ref.dtype)


def _pick_tm(batch):
    """Largest multiple-of-8 row tile <= 512, but keep >= 2 grid tiles whenever
    the batch allows so v7x's two TensorCores both receive work."""
    cap = 512
    if batch >= 16:
        cap = min(cap, batch // 2)
    tm = max(8, min(cap, batch))
    return (tm // 8) * 8


def mlp_forward(x, w1, b1, w2, b2, *, tm=None, out_dtype=jnp.float32):
    """Fused 2-layer MLP. x: (B, D_in), w1: (D_in, H), b1: (H,),
    w2: (H, D_out), b2: (D_out,)."""
    B, d_in = x.shape
    hid = w1.shape[1]
    d_out = w2.shape[1]

    if tm is None:
        tm = _pick_tm(B)
    tm = max(8, min(tm, B) // 8 * 8) if B >= 8 else B

    # Ragged batch: pad rows up to a multiple of tm, slice the result back.
    n_tiles = pl.cdiv(B, tm)
    b_pad = n_tiles * tm
    x_in = x if b_pad == B else jnp.pad(x, ((0, b_pad - B), (0, 0)))

    b1_2d = b1.reshape(1, hid).astype(jnp.float32)
    b2_2d = b2.reshape(1, d_out).astype(jnp.float32)

    # Advisory cost hint for the XLA scheduler.
    flops = 2 * B * (d_in * hid + hid * d_out)
    bytes_accessed = (x.size * x.dtype.itemsize
                      + w1.size * w1.dtype.itemsize + b1.size * 4
                      + w2.size * w2.dtype.itemsize + b2.size * 4
                      + B * d_out * jnp.dtype(out_dtype).itemsize)
    cost = pl.CostEstimate(flops=flops, transcendentals=0,
                           bytes_accessed=bytes_accessed)

    out = pl.pallas_call(
        mlp_kernel,
        out_shape=jax.ShapeDtypeStruct((b_pad, d_out), out_dtype),
        grid=(n_tiles,),
        in_specs=[
            pl.BlockSpec((tm, d_in), lambda i: (i, 0)),    # x row tile (streamed)
            pl.BlockSpec((d_in, hid), lambda i: (0, 0)),   # W1 (resident, no re-DMA)
            pl.BlockSpec((1, hid), lambda i: (0, 0)),      # b1
            pl.BlockSpec((hid, d_out), lambda i: (0, 0)),  # W2 (resident, no re-DMA)
            pl.BlockSpec((1, d_out), lambda i: (0, 0)),    # b2
        ],
        out_specs=pl.BlockSpec((tm, d_out), lambda i: (i, 0)),
        compiler_params=pltpu.CompilerParams(
            dimension_semantics=("parallel",)),
        cost_estimate=cost,
    )(x_in, w1, b1_2d, w2, b2_2d)

    return out if b_pad == B else out[:B]


def _linear_init(key, fan_in, fan_out):
    """nn.Linear default init: U(-1/sqrt(fan_in), 1/sqrt(fan_in)) for W and b."""
    kw, kb = jax.random.split(key)
    bound = 1.0 / jnp.sqrt(jnp.asarray(fan_in, jnp.float32))
    w = jax.random.uniform(kw, (fan_in, fan_out), jnp.float32, -bound, bound)
    b = jax.random.uniform(kb, (fan_out,), jnp.float32, -bound, bound)
    return w, b


if __name__ == "__main__":
    # Lane-dense sizes (feature dims = 128 -> full unmasked vst);
    # batch = 256 -> tm=128, 2 row tiles over the "parallel" grid axis
    # (both v7x TensorCores get a tile).
    batch = 256
    input_dim = 128
    hidden_dim = 128
    output_dim = 128

    key = jax.random.PRNGKey(0)
    k_x, k_l1, k_l2 = jax.random.split(key, 3)

    x = jax.random.normal(k_x, (batch, input_dim), jnp.float32)
    w1, b1 = _linear_init(k_l1, input_dim, hidden_dim)
    w2, b2 = _linear_init(k_l2, hidden_dim, output_dim)

    out = mlp_forward(x, w1, b1, w2, b2)
    jax.block_until_ready(out)

    # Pure-JAX f32 reference. The kernel intentionally trades precision for
    # speed by feeding the MXU bf16 operands (f32 accumulation), hence the
    # loose tolerance — this is NOT exact f32 parity with PyTorch.
    ref = jnp.maximum(x @ w1 + b1[None, :], 0.0) @ w2 + b2[None, :]
    assert out.shape == (batch, output_dim)
    assert bool(jnp.allclose(out, ref, rtol=5e-2, atol=5e-2)), "mismatch vs reference"

    print("KERNEL_OK")
</pallas_src>

<mosaic_0001>
module attributes {stable_mosaic.version = 11 : i64} {
  func.func @mlp_kernel(%arg0: i32, %arg1: memref<128x128xf32, #tpu.memory_space<vmem>>, %arg2: memref<128x128xf32, #tpu.memory_space<vmem>>, %arg3: memref<1x128xf32, #tpu.memory_space<vmem>>, %arg4: memref<128x128xf32, #tpu.memory_space<vmem>>, %arg5: memref<1x128xf32, #tpu.memory_space<vmem>>, %arg6: memref<128x128xf32, #tpu.memory_space<vmem>>) attributes {dimension_semantics = [#tpu.dimension_semantics<parallel>], iteration_bounds = array<i64: 2>, scalar_prefetch = 0 : i64, scratch_operands = 0 : i64, tpu.core_type = #tpu.core_type<tc>, window_params = [{transform_indices = @transform_0, window_bounds = array<i64: 128, 128>}, {pipeline_mode = #tpu.pipeline_mode<synchronous>, transform_indices = @transform_1, window_bounds = array<i64: 128, 128>}, {pipeline_mode = #tpu.pipeline_mode<synchronous>, transform_indices = @transform_2, window_bounds = array<i64: 1, 128>}, {pipeline_mode = #tpu.pipeline_mode<synchronous>, transform_indices = @transform_3, window_bounds = array<i64: 128, 128>}, {pipeline_mode = #tpu.pipeline_mode<synchronous>, transform_indices = @transform_4, window_bounds = array<i64: 1, 128>}, {transform_indices = @transform_5, window_bounds = array<i64: 128, 128>}]} {
    %c0 = arith.constant 0 : index
    %c0_0 = arith.constant 0 : index
    %0 = vector.load %arg1[%c0, %c0_0] : memref<128x128xf32, #tpu.memory_space<vmem>>, vector<128x128xf32>
    %1 = arith.truncf %0 : vector<128x128xf32> to vector<128x128xbf16>
    %c0_1 = arith.constant 0 : index
    %c0_2 = arith.constant 0 : index
    %2 = vector.load %arg2[%c0_1, %c0_2] : memref<128x128xf32, #tpu.memory_space<vmem>>, vector<128x128xf32>
    %3 = arith.truncf %2 : vector<128x128xf32> to vector<128x128xbf16>
    %cst = arith.constant dense<0.000000e+00> : vector<128x128xf32>
    %4 = tpu.matmul %1, %3, %cst {dimension_numbers = #tpu.dot_dimension_numbers<[1], [0], [0], [1], [0, 0, 1, 1], [], []>} : vector<128x128xbf16>, vector<128x128xbf16>, vector<128x128xf32> -> vector<128x128xf32>
    %c0_3 = arith.constant 0 : index
    %c0_4 = arith.constant 0 : index
    %5 = vector.load %arg3[%c0_3, %c0_4] : memref<1x128xf32, #tpu.memory_space<vmem>>, vector<1x128xf32>
    %6 = vector.broadcast %5 : vector<1x128xf32> to vector<128x128xf32>
    %7 = arith.addf %4, %6 : vector<128x128xf32>
    %cst_5 = arith.constant 0.000000e+00 : f32
    %8 = vector.broadcast %cst_5 : f32 to vector<128x128xf32>
    %9 = arith.maximumf %7, %8 : vector<128x128xf32>
    %c0_6 = arith.constant 0 : index
    %c0_7 = arith.constant 0 : index
    %10 = vector.load %arg4[%c0_6, %c0_7] : memref<128x128xf32, #tpu.memory_space<vmem>>, vector<128x128xf32>
    %11 = arith.truncf %10 : vector<128x128xf32> to vector<128x128xbf16>
    %12 = arith.truncf %9 : vector<128x128xf32> to vector<128x128xbf16>
    %cst_8 = arith.constant dense<0.000000e+00> : vector<128x128xf32>
    %13 = tpu.matmul %12, %11, %cst_8 {dimension_numbers = #tpu.dot_dimension_numbers<[1], [0], [0], [1], [0, 0, 1, 1], [], []>} : vector<128x128xbf16>, vector<128x128xbf16>, vector<128x128xf32> -> vector<128x128xf32>
    %c0_9 = arith.constant 0 : index
    %c0_10 = arith.constant 0 : index
    %14 = vector.load %arg5[%c0_9, %c0_10] : memref<1x128xf32, #tpu.memory_space<vmem>>, vector<1x128xf32>
    %15 = vector.broadcast %14 : vector<1x128xf32> to vector<128x128xf32>
    %16 = arith.addf %13, %15 : vector<128x128xf32>
    %c0_11 = arith.constant 0 : index
    %c0_12 = arith.constant 0 : index
    %17 = vector.load %arg6[%c0_11, %c0_12] : memref<128x128xf32, #tpu.memory_space<vmem>>, vector<128x128xf32>
    tpu.vector_store %arg6[%c0_11, %c0_12], %16 {strides = array<i32>} : memref<128x128xf32, #tpu.memory_space<vmem>>, vector<128x128xf32>,
    return
  }
  func.func @transform_0(%arg0: i32) -> (i32, i32) {
    %c0_i32 = arith.constant 0 : i32
    %c0_i32_0 = arith.constant 0 : i32
    return %arg0, %c0_i32 : i32, i32
  }
  func.func @transform_1(%arg0: i32) -> (i32, i32) {
    %c0_i32 = arith.constant 0 : i32
    %c0_i32_0 = arith.constant 0 : i32
    %c0_i32_1 = arith.constant 0 : i32
    return %c0_i32, %c0_i32_0 : i32, i32
  }
  func.func @transform_2(%arg0: i32) -> (i32, i32) {
    %c0_i32 = arith.constant 0 : i32
    %c0_i32_0 = arith.constant 0 : i32
    %c0_i32_1 = arith.constant 0 : i32
    return %c0_i32, %c0_i32_0 : i32, i32
  }
  func.func @transform_3(%arg0: i32) -> (i32, i32) {
    %c0_i32 = arith.constant 0 : i32
    %c0_i32_0 = arith.constant 0 : i32
    %c0_i32_1 = arith.constant 0 : i32
    return %c0_i32, %c0_i32_0 : i32, i32
  }
  func.func @transform_4(%arg0: i32) -> (i32, i32) {
    %c0_i32 = arith.constant 0 : i32
    %c0_i32_0 = arith.constant 0 : i32
    %c0_i32_1 = arith.constant 0 : i32
    return %c0_i32, %c0_i32_0 : i32, i32
  }
  func.func @transform_5(%arg0: i32) -> (i32, i32) {
    %c0_i32 = arith.constant 0 : i32
    %c0_i32_0 = arith.constant 0 : i32
    return %arg0, %c0_i32 : i32, i32
  }
}

</mosaic_0001>

<bundles_post_ra>
// kernel: tpu_custom_call.1
= control target key start
LH: loop header
LB: loop body
LE: loop exit
PB: predicated region body
PF: predicated region fallthrough
CT: control target
= control target key end

     0   :  { %10 = vsyncpa [#allocation3], 0  ;;  %s1376_s0 = inlined_call_operand.hbm [shape: f32[256,128], index: 0, kind: input, shape index: {}]   ;;  %s1377_s1 = inlined_call_operand.hbm [shape: f32[128,128], index: 1, kind: input, shape index: {}]   ;;  %s1378_s2 = inlined_call_operand.vmem [shape: f32[1,128], index: 2, kind: input, shape index: {}]   ;;  %s1379_s3 = inlined_call_operand.hbm [shape: f32[128,128], index: 3, kind: input, shape index: {}]   ;;  %s1380_s4 = inlined_call_operand.vmem [shape: f32[1,128], index: 4, kind: input, shape index: {}]   ;;  %s1381_s5 = inlined_call_operand.hbm [shape: f32[256,128], index: 5, kind: output, shape index: {}]  }
   0x1   :  { %12 = vsyncpa [#allocation3 + $0x1], 0 }
   0x2   :  { %13 = vsyncpa [#allocation6], 0 }
   0x3   :  { %14 = vsyncpa [#allocation4], 0 }
   0x4   :  { %16 = vsyncpa [#allocation4 + $0x1], 0  ;;  %s1086_s18 = smov 0   ;;  %s1088_s19 = smov 0  }
   0x5   :  { %s1090_s20 = smov 0   ;;  %s1092_s21 = smov 0  }
   0x6 LB: > { %s1107_s22 = sadd.s32 4294967295, %s1046_s21   ;;  %s701_s23 = sadd.s32 4294967294, %s1046_s21   ;;  %s1046_s21 = sphi %s1092_s21, %s1401_s21   ;;  %s1042_s20 = sphi %s1090_s20, %s1400_s20   ;;  %s1038_s19 = sphi %s1088_s19, %s1399_s19   ;;  %s1034_s18 = sphi %s1086_s18, %s1398_s18  }
   0x7   : > { %p42_p0 = scmp.ne.s32.totalorder %s1038_s19, %s1034_s18  ;;  %p1382_p1 = scmp.eq.s32.totalorder %s1107_s22, 0 }
   0x8   : > { %p156_p3 = scmp.eq.s32.totalorder %s701_s23, 1  ;;  %p702_p5 = scmp.ge.s32.totalorder %s1046_s21, 1 }
   0x9   : > { %p1116_p4 = por %p1382_p1, %p42_p0  ;;  %p163_p7 = scmp.lt.s32.totalorder %s1046_s21, 3 }
   0xa   : > { %p1121_p6 = por %p156_p3, %p42_p0  ;;  %s1048_s27 = smov [#allocation5]  }
   0xb   : > { %s1385_s24 = scalar_select %p1116_p4, 1, 0 }
   0xc   : > { %s1386_s25 = scalar_select %p1121_p6, 1, 0 }
   0xd   : > { %p1126_p8 = pnand %p702_p5, %p163_p7  ;;  %s175_s28 = sshll.u32 %s1048_s27, 4  ;;  %s1130_s28 = int_to_ptr.vmem [resolvable:$true] %s175_s28 }
   0xe   : > { %s1049_s30 = smov [#allocation7]   ;;  %s890_s9 = scalar_lea.hbm %s1377_s1, 2048 }
   0xf   : > { %p831_p9 = pneg %p1126_p8  ;;  %s191_s6 = sshll.u32 %s1049_s30, 4  ;;  %s1141_s6 = int_to_ptr.vmem [resolvable:$true] %s191_s6 }
  0x10   : > { %p891_p12 = scmp.ne.s32.totalorder %s1377_s1, %s890_s9  ;;  %p897_p5 = scmp.lt.u32.totalorder %s890_s9, %s1377_s1 }
  0x11   : > { %p1137_p11 = pnand %p831_p9, %p1382_p1 }
  0x13   : > { %p892_p13 = pneg %p1137_p11 }
  0x15   : > { %p893_p0 = pnand %p892_p13, %p891_p12 }
  0x17   : > { %p894_p3 = pneg %p893_p0 }
  0x19   : > { %p899_p7 = pnand %p897_p5, %p894_p3 }
  0x1b   : > { %902 = shalt.err (!%p899_p7)
}
  0x1c   : > { %s903_s14 = scalar_lea.vmem %s1130_s28, 2048  ;;  %p911_p2 = scmp.lt.s32.totalorder %s1130_s28, %s1130_s28 }
  0x1d   : > { %p904_p9 = scmp.ne.s32.totalorder %s1130_s28, %s903_s14  ;;  %p912_p12 = scmp.lt.s32.totalorder %s903_s14, %s903_s14 }
  0x1f   : > { %p906_p10 = pnand %p904_p9, %p892_p13  ;;  %p913_p0 = por %p912_p12, %p911_p2 }
  0x21   : > { %p907_p1 = pneg %p906_p10 }
  0x23   : > { %p914_p6 = pnand %p913_p0, %p907_p1 }
  0x25   : > { %917 = shalt.err (!%p914_p6)
}
  0x26   : > { %s1050_s15 = smov 128   ;;  %s1051_s16 = smov 8  }
  0x27   : > { %834 = dma.hbm_to_vmem [thread:$0]  (!%p1137_p11), %s1377_s1, 2048, %s1130_s28, [#allocation6], %s1050_s15, %s1050_s15, %s1051_s16  }
  0x28   : > { %s918_s7 = scalar_lea.hbm %s1379_s3, 2048 }
  0x29   : > { %p919_p1 = scmp.ne.s32.totalorder %s1379_s3, %s918_s7  ;;  %p925_p10 = scmp.lt.u32.totalorder %s918_s7, %s1379_s3 }
  0x2b   : > { %p921_p2 = pnand %p919_p1, %p892_p13 }
  0x2d   : > { %p922_p6 = pneg %p921_p2 }
  0x2f   : > { %p927_p3 = pnand %p925_p10, %p922_p6 }
  0x31   : > { %930 = shalt.err (!%p927_p3)
}
  0x32   : > { %s931_s28 = scalar_lea.vmem %s1141_s6, 2048  ;;  %p939_p12 = scmp.lt.s32.totalorder %s1141_s6, %s1141_s6 }
  0x33   : > { %p932_p5 = scmp.ne.s32.totalorder %s1141_s6, %s931_s28  ;;  %p940_p0 = scmp.lt.s32.totalorder %s931_s28, %s931_s28 }
  0x35   : > { %p934_p7 = pnand %p932_p5, %p892_p13  ;;  %p941_p1 = por %p940_p0, %p939_p12 }
  0x37   : > { %p935_p9 = pneg %p934_p7 }
  0x39   : > { %p942_p2 = pnand %p941_p1, %p935_p9 }
  0x3b   : > { %945 = shalt.err (!%p942_p2)
}
  0x3c   : > { %837 = dma.hbm_to_vmem [thread:$0]  (!%p1137_p11), %s1379_s3, 2048, %s1141_s6, [#allocation6], %s1050_s15, %s1050_s15, %s1051_s16  }
  0x3d   : > { %s1202_s29 = sadd.s32 1, %s1046_s21   ;;  %s29_s14 = sadd.s32 1, %s1042_s20 }
  0x3e   : > { %s26_s17 = ssub.s32 %s1046_s21, %s1202_s29  ;;  %p36_p13 = scmp.ne.s32.totalorder %s1042_s20, %s1038_s19 }
  0x3f   : > { %p27_p6 = scmp.eq.s32.totalorder %s26_s17, 0  ;;  %p37_p10 = scmp.eq.s32.totalorder %s1046_s21, 0 }
  0x40   : > { %p1389_p3 = scmp.eq.s32.totalorder %s1107_s22, 1  ;;  %p848_p7 = scmp.lt.s32.totalorder %s1046_s21, 2 }
  0x41   : > { %s1218_s27 = scalar_select %p27_p6, %s1042_s20, %s29_s14  }
  0x42   : > { %p1212_p5 = por %p1389_p3, %p36_p13  ;;  %p38_p9 = por %p37_p10, %p36_p13 }
  0x43   : > { %s208_s30 = sand.u32 1, %s1042_s20   ;;  %s721_s6 = sshll.u32 %s1046_s21, 11 }
  0x44   : > { %s1390_s23 = scalar_select %p1212_p5, 1, 0 }
  0x45   : > { %s706_s7 = sshll.u32 %s208_s30, 7  ;;  %s1225_s10 = scalar_lea.hbm %s1376_s0, %s721_s6 }
  0x46   : > { %s212_s11 = scalar_lea.vmem [#allocation2], %s706_s7  ;;  %p1229_p11 = pnand %p848_p7, %p38_p9 }
  0x47   : > { %s219_s28 = sshll.u32 %s212_s11, 4  ;;  %s1233_s13 = scalar_lea.sflag [#allocation3], %s208_s30  ;;  %s1227_s28 = int_to_ptr.vmem [resolvable:$true] %s219_s28 }
  0x48   : > { %s946_s14 = scalar_lea.hbm %s1225_s10, 2048  ;;  %p948_p0 = pneg %p1229_p11 }
  0x49   : > { %p947_p12 = scmp.ne.s32.totalorder %s1225_s10, %s946_s14  ;;  %s951_s6 = scalar_lea.hbm %s1376_s0, 4096 }
  0x4a   : > { %p952_p13 = scmp.lt.u32.totalorder %s1225_s10, %s1376_s0  ;;  %p953_p6 = scmp.lt.u32.totalorder %s951_s6, %s946_s14 }
  0x4b   : > { %p949_p1 = pnand %p948_p0, %p947_p12  ;;  %p955_p3 = scmp.lt.u32.totalorder %s946_s14, %s1225_s10 }
  0x4c   : > { %p954_p10 = por %p953_p6, %p952_p13 }
  0x4d   : > { %p950_p2 = pneg %p949_p1 }
  0x4e   : > { %p956_p7 = por %p955_p3, %p954_p10 }
  0x50   : > { %p957_p9 = pnand %p956_p7, %p950_p2 }
  0x52   : > { %960 = shalt.err (!%p957_p9)
}
  0x53   : > { %s961_s30 = scalar_lea.vmem %s1227_s28, 2048  ;;  %s1052_s11 = smov [#allocation2]  }
  0x54   : > { %p962_p12 = scmp.ne.s32.totalorder %s1227_s28, %s961_s30  ;;  %s966_s17 = sshll.u32 %s1052_s11, 4  ;;  %s967_s17 = int_to_ptr.vmem [resolvable:$false] %s966_s17 }
  0x55   : > { %s968_s7 = scalar_lea.vmem %s967_s17, 4096  ;;  %p969_p4 = scmp.lt.s32.totalorder %s1227_s28, %s967_s17 }
  0x56   : > { %p964_p1 = pnand %p962_p12, %p948_p0  ;;  %p970_p13 = scmp.lt.s32.totalorder %s968_s7, %s961_s30 }
  0x58   : > { %p965_p5 = pneg %p964_p1  ;;  %p971_p6 = por %p970_p13, %p969_p4 }
  0x5a   : > { %p972_p10 = pnand %p971_p6, %p965_p5 }
  0x5c   : > { %975 = shalt.err (!%p972_p10)
}
  0x5d   : > { %841 = dma.hbm_to_vmem [thread:$0]  (!%p1229_p11), %s1225_s10, 2048, %s1227_s28, %s1233_s13, %s1050_s15, %s1050_s15, %s1051_s16  }
  0x5e   : > { %231 = sbr.rel (%p1126_p8) target bundleno = 618 (0x26a), region = 40  ;;  %s1267_s14 = sand.u32 (!%p1126_p8), 1, %s1038_s19  }
  0x5f   : > { %s710_s6 = sshll.u32 (!%p1126_p8), %s1267_s14, 7  ;;  %s234_s8 = scalar_lea.sflag (!%p1126_p8), [#allocation3], %s1267_s14 }
  0x60   : > { %s1273_s12 = scalar_lea.vmem (!%p1126_p8), [#allocation2], %s710_s6  ;;  %p1392_p4 = scmp.ne.s32.totalorder (!%p1126_p8), %s1385_s24, 0 }
  0x65   : > { %1021 = dma.done.wait (%p1392_p4), %s234_s8, 2048  }
  0x66   : > { %1023 = vsyncadd (%p1392_p4), %s234_s8, 4294965248  ;;  %p1393_p5 = scmp.eq.s32.totalorder %s1107_s22, 0 }
  0x68   : > { %1025 = dma.done.wait (%p1393_p5), [#allocation6], 4096   ;;  %p1394_p8 = pmov %p1393_p5 }
  0x69   : > { %v299_v0 = vld [vmem:[#allocation5] sm:$0xff]  ;;  %v300_v1 = vld [vmem:[#allocation5 + $0x8] sm:$0xff]  ;;  %v301_v2 = vld [vmem:[#allocation5 + $0x10] sm:$0xff]  ;;  %s1307_s10 = scalar_lea.vmem [#allocation8], %s710_s6  ;;  %s722_s28 = sshll.u32 %s1107_s22, 11 }
  0x6a   : > { %1027 = vsyncadd (%p1394_p8), [#allocation6], 4294963200  ;;  %v315_v3 = vpack.c.bf16 %v300_v1, %v299_v0  ;;  %v302_v4 = vld [vmem:[#allocation5 + $0x18] sm:$0xff]  ;;  %v303_v6 = vld [vmem:[#allocation5 + $0x20] sm:$0xff]  ;;  %s609_s13 = sshll.u32 %s1307_s10, 4  ;;  %s1327_s11 = scalar_lea.hbm %s1381_s5, %s722_s28  ;;  %s1329_s13 = int_to_ptr.vmem [resolvable:$true] %s609_s13 }
  0x6b   : > { %v316_v5 = vpack.c.bf16 %v302_v4, %v301_v2  ;;  %v304_v7 = vld [vmem:[#allocation5 + $0x28] sm:$0xff]  ;;  %v275_v9 = vld [vmem:[%s1273_s12] sm:$0xff]  ;;  %v305_v11 = vld [vmem:[#allocation5 + $0x30] sm:$0xff]  ;;  %s596_s22 = scalar_lea.sflag [#allocation4], %s1267_s14  ;;  %s976_s17 = scalar_lea.vmem %s1329_s13, 2048 }
  0x6c   : > { %755 = vmatprep.subr.bf16.mxu0 %v315_v3  ;;  %v317_v8 = vpack.c.bf16 %v304_v7, %v303_v6  ;;  %v276_v10 = vld [vmem:[%s1273_s12 + $0x8] sm:$0xff]  ;;  %v306_v12 = vld [vmem:[#allocation5 + $0x38] sm:$0xff]  ;;  %v307_v15 = vld [vmem:[#allocation5 + $0x40] sm:$0xff]  ;;  %p977_p11 = scmp.ne.s32.totalorder %s1329_s13, %s976_s17  ;;  %p1395_p0 = scmp.ne.s32.totalorder %s1390_s23, 0 }
  0x6d   : > { %756 = vmatpush3.bf16.msra.mxu0 %v315_v3  ;;  %v291_v13 = vpack.c.bf16 %v276_v10, %v275_v9  ;;  %v318_v14 = vpack.c.bf16 %v306_v12, %v305_v11  ;;  %v308_v16 = vld [vmem:[#allocation5 + $0x48] sm:$0xff]  ;;  %v443_v17 = vld [vmem:[#allocation7] sm:$0xff]  ;;  %v445_v19 = vld [vmem:[#allocation7 + $0x10] sm:$0xff]  ;;  %s1053_s7 = smov [#allocation8]  }
  0x6e   : > { %757 = vmatprep.subr.bf16.mxu0 %v316_v5  ;;  %v444_v18 = vld [vmem:[#allocation7 + $0x8] sm:$0xff]  ;;  %v446_v20 = vld [vmem:[#allocation7 + $0x18] sm:$0xff]  ;;  %v319_v23 = vpack.c.bf16 %v308_v16, %v307_v15  ;;  %v447_v24 = vld [vmem:[#allocation7 + $0x20] sm:$0xff]  ;;  %p978_p2 = pnand %p977_p11, %p1395_p0  ;;  %s980_s6 = sshll.u32 %s1053_s7, 4  ;;  %s981_s6 = int_to_ptr.vmem [resolvable:$false] %s980_s6 }
  0x6f   : > { %771 = vmatprep.mubr.bf16.mxu0 %v291_v13  ;;  %v459_v21 = vpack.c.bf16 %v444_v18, %v443_v17  ;;  %v460_v22 = vpack.c.bf16 %v446_v20, %v445_v19  ;;  %v448_v25 = vld [vmem:[#allocation7 + $0x28] sm:$0xff]  ;;  %v309_v26 = vld [vmem:[#allocation5 + $0x50] sm:$0xff]  ;;  %v310_v27 = vld [vmem:[#allocation5 + $0x58] sm:$0xff]  ;;  %s982_s8 = scalar_lea.vmem %s981_s6, 4096  ;;  %p983_p7 = scmp.lt.s32.totalorder %s1329_s13, %s981_s6 }
  0x70   : > { %v461_v28 = vpack.c.bf16 %v448_v25, %v447_v24  ;;  %v320_v29 = vpack.c.bf16 %v310_v27, %v309_v26  ;;  %v449_v30 = vld [vmem:[#allocation7 + $0x30] sm:$0xff]  ;;  %v450_v31 = vld [vmem:[#allocation7 + $0x38] sm:$0xff]  ;;  %v311_v32 = vld [vmem:[#allocation5 + $0x60] sm:$0xff]  ;;  %p979_p3 = pneg %p978_p2  ;;  %p984_p9 = scmp.lt.s32.totalorder %s982_s8, %s976_s17 }
  0x71   : > { %758 = vmatpush3.bf16.msra.mxu0 %v316_v5  ;;  %787 = vmatprep.subr.bf16.mxu1 %v459_v21  ;;  %v312_v33 = vld [vmem:[#allocation5 + $0x68] sm:$0xff]  ;;  %v462_v34 = vpack.c.bf16 %v450_v31, %v449_v30  ;;  %v451_v36 = vld [vmem:[#allocation7 + $0x40] sm:$0xff]  ;;  %v313_v38 = vld [vmem:[#allocation5 + $0x70] sm:$0xff] }
  0x72   : > { %759 = vmatprep.subr.bf16.mxu0 %v317_v8  ;;  %788 = vmatpush3.bf16.msra.mxu1 %v459_v21  ;;  %v321_v35 = vpack.c.bf16 %v312_v33, %v311_v32  ;;  %v452_v37 = vld [vmem:[#allocation7 + $0x48] sm:$0xff]  ;;  %v314_v39 = vld [vmem:[#allocation5 + $0x78] sm:$0xff]  ;;  %v453_v42 = vld [vmem:[#allocation7 + $0x50] sm:$0xff]  ;;  %p985_p12 = por %p984_p9, %p983_p7 }
  0x73   : > { %789 = vmatprep.subr.bf16.mxu1 %v460_v22  ;;  %v463_v40 = vpack.c.bf16 %v452_v37, %v451_v36  ;;  %v322_v41 = vpack.c.bf16 %v314_v39, %v313_v38  ;;  %v454_v43 = vld [vmem:[#allocation7 + $0x58] sm:$0xff]  ;;  %v277_v44 = vld [vmem:[%s1273_s12 + $0x10] sm:$0xff]  ;;  %v279_v47 = vld [vmem:[%s1273_s12 + $0x20] sm:$0xff] }
  0x74   : > { %v278_v45 = vld [vmem:[%s1273_s12 + $0x18] sm:$0xff]  ;;  %v464_v46 = vpack.c.bf16 %v454_v43, %v453_v42  ;;  %v280_v48 = vld [vmem:[%s1273_s12 + $0x28] sm:$0xff]  ;;  %v281_v51 = vld [vmem:[%s1273_s12 + $0x30] sm:$0xff]  ;;  %p986_p1 = pnand %p985_p12, %p979_p3 }
  0x75   : > { %760 = vmatpush3.bf16.msra.mxu0 %v317_v8  ;;  %v292_v49 = vpack.c.bf16 %v278_v45, %v277_v44  ;;  %v293_v50 = vpack.c.bf16 %v280_v48, %v279_v47  ;;  %v282_v52 = vld [vmem:[%s1273_s12 + $0x38] sm:$0xff]  ;;  %v283_v53 = vld [vmem:[%s1273_s12 + $0x40] sm:$0xff]  ;;  %v284_v54 = vld [vmem:[%s1273_s12 + $0x48] sm:$0xff] }
  0x76   : > { %761 = vmatprep.subr.bf16.mxu0 %v318_v14  ;;  %790 = vmatpush3.bf16.msra.mxu1 %v460_v22  ;;  %v294_v55 = vpack.c.bf16 %v282_v52, %v281_v51  ;;  %v295_v56 = vpack.c.bf16 %v284_v54, %v283_v53  ;;  %v285_v57 = vld [vmem:[%s1273_s12 + $0x50] sm:$0xff]  ;;  %v286_v58 = vld [vmem:[%s1273_s12 + $0x58] sm:$0xff]  ;;  %v287_v59 = vld [vmem:[%s1273_s12 + $0x60] sm:$0xff] }
  0x77   : > { %791 = vmatprep.subr.bf16.mxu1 %v461_v28  ;;  %v288_v60 = vld [vmem:[%s1273_s12 + $0x68] sm:$0xff]  ;;  %v296_v61 = vpack.c.bf16 %v286_v58, %v285_v57  ;;  %v289_v63 = vld [vmem:[%s1273_s12 + $0x70] sm:$0xff]  ;;  %v290_v0 = vld [vmem:[%s1273_s12 + $0x78] sm:$0xff] }
  0x78   : > { %v297_v62 = vpack.c.bf16 %v288_v60, %v287_v59  ;;  %v298_v1 = vpack.c.bf16 %v290_v0, %v289_v63  ;;  %v455_v2 = vld [vmem:[#allocation7 + $0x60] sm:$0xff]  ;;  %v456_v3 = vld [vmem:[#allocation7 + $0x68] sm:$0xff]  ;;  %v457_v5 = vld [vmem:[#allocation7 + $0x70] sm:$0xff] }
  0x79   : > { %762 = vmatpush3.bf16.msra.mxu0 %v318_v14  ;;  %v465_v4 = vpack.c.bf16 %v456_v3, %v455_v2  ;;  %v458_v6 = vld [vmem:[#allocation7 + $0x78] sm:$0xff]  ;;  %v714_v8 = vld [vmem:[%s1378_s2] ss:$0 sm:$0xff] }
  0x7a   : > { %763 = vmatprep.subr.bf16.mxu0 %v319_v23  ;;  %792 = vmatpush3.bf16.msra.mxu1 %v461_v28  ;;  %v466_v7 = vpack.c.bf16 %v458_v6, %v457_v5 }
  0x7b   : > { %793 = vmatprep.subr.bf16.mxu1 %v462_v34 }
  0x7d   : > { %764 = vmatpush3.bf16.msra.mxu0 %v319_v23 }
  0x7e   : > { %765 = vmatprep.subr.bf16.mxu0 %v320_v29  ;;  %794 = vmatpush3.bf16.msra.mxu1 %v462_v34 }
  0x7f   : > { %795 = vmatprep.subr.bf16.mxu1 %v463_v40 }
  0x81   : > { %766 = vmatpush3.bf16.msra.mxu0 %v320_v29 }
  0x82   : > { %767 = vmatprep.subr.bf16.mxu0 %v321_v35  ;;  %796 = vmatpush3.bf16.msra.mxu1 %v463_v40 }
  0x83   : > { %797 = vmatprep.subr.bf16.mxu1 %v464_v46 }
  0x85   : > { %768 = vmatpush3.bf16.msra.mxu0 %v321_v35 }
  0x86   : > { %769 = vmatprep.subr.bf16.mxu0 %v322_v41  ;;  %798 = vmatpush3.bf16.msra.mxu1 %v464_v46 }
  0x87   : > { %799 = vmatprep.subr.bf16.mxu1 %v465_v4 }
  0x89   : > { %770 = vmatpush3.bf16.msra.mxu0 %v322_v41 }
  0x8a   : > { %800 = vmatpush3.bf16.msra.mxu1 %v465_v4 }
  0x8b   : > { %801 = vmatprep.subr.bf16.mxu1 %v466_v7 }
  0x8c   : > { %772 = vmatmul.mubr.bf16.vlgmr.msra.gmra.mrb[0].mxu0 %v292_v49 }
  0x8d   : > { %775 = vmatprep.mubr.bf16.mxu0 %v293_v50 }
  0x8e   : > { %802 = vmatpush3.bf16.msra.mxu1 %v466_v7 }
  0x94   : > { %776 = vmatmul.mubr.bf16.gmra.mrb[4].mxu0 %v294_v55 }
  0x95   : > { %779 = vmatprep.mubr.bf16.mxu0 %v295_v56 }
  0x9c   : > { %780 = vmatmul.mubr.bf16.gmra.mrb[8].mxu0 %v296_v61 }
  0x9d   : > { %783 = vmatprep.mubr.bf16.mxu0 %v297_v62 }
  0xa4   : > { %784 = vmatmul.mubr.bf16.gmra.mrb[12].mxu0 %v298_v1  ;;  %v715_v1 = vld [vmem:[%s1380_s4] ss:$0 sm:$0xff] }
 0x15f   : > { %v773_v9 = vpop.f32.mrb[0].mxu0 }
 0x160   : > { %v373_v10 = vadd.f32 %v773_v9, %v714_v8  ;;  %v364_v11 = vpop.f32.mrb[1].mxu0 }
 0x161   : > { %v365_v12 = vadd.f32 %v714_v8, %v364_v11  ;;  %v774_v13 = vpop.f32.mrb[2].mxu0 }
 0x162   : > { %v376_v14 = vadd.f32 %v774_v13, %v714_v8  ;;  %v367_v15 = vpop.f32.mrb[3].mxu0  ;;  %v429_v17 = vmax.f32 %v373_v10, 0.0 }
 0x163   : > { %v368_v16 = vadd.f32 %v714_v8, %v367_v15  ;;  %v427_v19 = vmax.f32 %v365_v12, 0.0 }
 0x164   : > { %v430_v18 = vmax.f32 %v376_v14, 0.0 }
 0x165   : > { %v428_v20 = vmax.f32 %v368_v16, 0.0 }
 0x166   : > { %v468_v21 = vpack.c.bf16 %v430_v18, %v429_v17 }
 0x167   : > { %v777_v22 = vpop.f32.mrb[4].mxu0  ;;  %v467_v23 = vpack.c.bf16 %v428_v20, %v427_v19 }
 0x168   : > { %v389_v24 = vadd.f32 %v777_v22, %v714_v8  ;;  %v380_v25 = vpop.f32.mrb[5].mxu0 }
 0x169   : > { %v381_v26 = vadd.f32 %v714_v8, %v380_v25  ;;  %v778_v27 = vpop.f32.mrb[6].mxu0  ;;  %803 = vmatprep.mubr.bf16.mxu1 %v467_v23 }
 0x16a   : > { %v392_v28 = vadd.f32 %v778_v27, %v714_v8  ;;  %v383_v29 = vpop.f32.mrb[7].mxu0  ;;  %804 = vmatmul.mubr.bf16.vlgmr.msra.gmra.mrb[0].mxu1 %v468_v21  ;;  %v433_v31 = vmax.f32 %v389_v24, 0.0 }
 0x16b   : > { %v384_v30 = vadd.f32 %v714_v8, %v383_v29  ;;  %v431_v33 = vmax.f32 %v381_v26, 0.0 }
 0x16c   : > { %v434_v32 = vmax.f32 %v392_v28, 0.0 }
 0x16d   : > { %v432_v34 = vmax.f32 %v384_v30, 0.0 }
 0x16e   : > { %v470_v35 = vpack.c.bf16 %v434_v32, %v433_v31 }
 0x16f   : > { %v469_v36 = vpack.c.bf16 %v432_v34, %v431_v33  ;;  %v781_v37 = vpop.f32.mrb[8].mxu0 }
 0x170   : > { %v405_v38 = vadd.f32 %v781_v37, %v714_v8  ;;  %v396_v39 = vpop.f32.mrb[9].mxu0 }
 0x171   : > { %v397_v40 = vadd.f32 %v714_v8, %v396_v39  ;;  %v782_v41 = vpop.f32.mrb[10].mxu0  ;;  %807 = vmatprep.mubr.bf16.mxu1 %v469_v36 }
 0x172   : > { %v408_v42 = vadd.f32 %v782_v41, %v714_v8  ;;  %v399_v43 = vpop.f32.mrb[11].mxu0  ;;  %808 = vmatmul.mubr.bf16.gmra.mrb[4].mxu1 %v470_v35  ;;  %v437_v45 = vmax.f32 %v405_v38, 0.0 }
 0x173   : > { %v400_v44 = vadd.f32 %v714_v8, %v399_v43  ;;  %v435_v47 = vmax.f32 %v397_v40, 0.0 }
 0x174   : > { %v438_v46 = vmax.f32 %v408_v42, 0.0 }
 0x175   : > { %v436_v48 = vmax.f32 %v400_v44, 0.0 }
 0x176   : > { %v472_v49 = vpack.c.bf16 %v438_v46, %v437_v45 }
 0x177   : > { %v471_v50 = vpack.c.bf16 %v436_v48, %v435_v47  ;;  %v785_v51 = vpop.f32.mrb[12].mxu0 }
 0x178   : > { %v421_v52 = vadd.f32 %v785_v51, %v714_v8  ;;  %v412_v53 = vpop.f32.mrb[13].mxu0 }
 0x179   : > { %v413_v54 = vadd.f32 %v714_v8, %v412_v53  ;;  %v786_v55 = vpop.f32.mrb[14].mxu0  ;;  %811 = vmatprep.mubr.bf16.mxu1 %v471_v50 }
 0x17a   : > { %v424_v56 = vadd.f32 %v786_v55, %v714_v8  ;;  %v415_v57 = vpop.f32.mrb[15].mxu0  ;;  %812 = vmatmul.mubr.bf16.gmra.mrb[8].mxu1 %v472_v49  ;;  %v441_v59 = vmax.f32 %v421_v52, 0.0 }
 0x17b   : > { %v416_v58 = vadd.f32 %v714_v8, %v415_v57  ;;  %v439_v61 = vmax.f32 %v413_v54, 0.0 }
 0x17c   : > { %v442_v60 = vmax.f32 %v424_v56, 0.0 }
 0x17d   : > { %v440_v62 = vmax.f32 %v416_v58, 0.0 }
 0x17e   : > { %v474_v63 = vpack.c.bf16 %v442_v60, %v441_v59 }
 0x17f   : > { %v473_v0 = vpack.c.bf16 %v440_v62, %v439_v61 }
 0x181   : > { %815 = vmatprep.mubr.bf16.mxu1 %v473_v0 }
 0x182   : > { %816 = vmatmul.mubr.bf16.gmra.mrb[12].mxu1 %v474_v63 }
 0x23d   : > { %v805_v2 = vpop.f32.mrb[0].mxu1 }
 0x23e   : > { %v525_v3 = vadd.f32 %v805_v2, %v715_v1  ;;  %v516_v4 = vpop.f32.mrb[1].mxu1 }
 0x23f   : > { %v517_v5 = vadd.f32 %v715_v1, %v516_v4  ;;  %v806_v6 = vpop.f32.mrb[2].mxu1 }
 0x240   : > { %581 = vst [vmem:[%s1307_s10 + $0x10] sm:$0xff] %v525_v3  ;;  %v528_v7 = vadd.f32 %v806_v6, %v715_v1  ;;  %v519_v8 = vpop.f32.mrb[3].mxu1 }
 0x241   : > { %579 = vst [vmem:[%s1307_s10] sm:$0xff] %v517_v5  ;;  %v520_v9 = vadd.f32 %v715_v1, %v519_v8 }
 0x242   : > { %582 = vst [vmem:[%s1307_s10 + $0x18] sm:$0xff] %v528_v7 }
 0x243   : > { %580 = vst [vmem:[%s1307_s10 + $0x8] sm:$0xff] %v520_v9 }
 0x245   : > { %v809_v10 = vpop.f32.mrb[4].mxu1 }
 0x246   : > { %v541_v11 = vadd.f32 %v809_v10, %v715_v1  ;;  %v532_v12 = vpop.f32.mrb[5].mxu1 }
 0x247   : > { %v533_v13 = vadd.f32 %v715_v1, %v532_v12  ;;  %v810_v14 = vpop.f32.mrb[6].mxu1 }
 0x248   : > { %585 = vst [vmem:[%s1307_s10 + $0x30] sm:$0xff] %v541_v11  ;;  %v544_v15 = vadd.f32 %v810_v14, %v715_v1  ;;  %v535_v16 = vpop.f32.mrb[7].mxu1 }
 0x249   : > { %583 = vst [vmem:[%s1307_s10 + $0x20] sm:$0xff] %v533_v13  ;;  %v536_v17 = vadd.f32 %v715_v1, %v535_v16 }
 0x24a   : > { %586 = vst [vmem:[%s1307_s10 + $0x38] sm:$0xff] %v544_v15 }
 0x24b   : > { %584 = vst [vmem:[%s1307_s10 + $0x28] sm:$0xff] %v536_v17 }
 0x24d   : > { %v813_v18 = vpop.f32.mrb[8].mxu1 }
 0x24e   : > { %v557_v19 = vadd.f32 %v813_v18, %v715_v1  ;;  %v548_v20 = vpop.f32.mrb[9].mxu1 }
 0x24f   : > { %v549_v21 = vadd.f32 %v715_v1, %v548_v20  ;;  %v814_v22 = vpop.f32.mrb[10].mxu1 }
 0x250   : > { %589 = vst [vmem:[%s1307_s10 + $0x50] sm:$0xff] %v557_v19  ;;  %v560_v23 = vadd.f32 %v814_v22, %v715_v1  ;;  %v551_v24 = vpop.f32.mrb[11].mxu1 }
 0x251   : > { %587 = vst [vmem:[%s1307_s10 + $0x40] sm:$0xff] %v549_v21  ;;  %v552_v25 = vadd.f32 %v715_v1, %v551_v24 }
 0x252   : > { %590 = vst [vmem:[%s1307_s10 + $0x58] sm:$0xff] %v560_v23 }
 0x253   : > { %588 = vst [vmem:[%s1307_s10 + $0x48] sm:$0xff] %v552_v25 }
 0x255   : > { %v817_v26 = vpop.f32.mrb[12].mxu1 }
 0x256   : > { %v573_v27 = vadd.f32 %v817_v26, %v715_v1  ;;  %v564_v28 = vpop.f32.mrb[13].mxu1 }
 0x257   : > { %v565_v29 = vadd.f32 %v715_v1, %v564_v28  ;;  %v818_v30 = vpop.f32.mrb[14].mxu1 }
 0x258   : > { %593 = vst [vmem:[%s1307_s10 + $0x70] sm:$0xff] %v573_v27  ;;  %v576_v31 = vadd.f32 %v818_v30, %v715_v1  ;;  %v567_v32 = vpop.f32.mrb[15].mxu1 }
 0x259   : > { %591 = vst [vmem:[%s1307_s10 + $0x60] sm:$0xff] %v565_v29  ;;  %v568_v33 = vadd.f32 %v715_v1, %v567_v32 }
 0x25a   : > { %594 = vst [vmem:[%s1307_s10 + $0x78] sm:$0xff] %v576_v31 }
 0x25b   : > { %592 = vst [vmem:[%s1307_s10 + $0x68] sm:$0xff] %v568_v33 }
 0x25c   : > { %989 = shalt.err (!%p986_p1)
}
 0x25d   : > { %s990_s12 = scalar_lea.hbm %s1327_s11, 2048  ;;  %s994_s15 = scalar_lea.hbm %s1381_s5, 4096 }
 0x25e   : > { %p991_p13 = scmp.ne.s32.totalorder %s1327_s11, %s990_s12  ;;  %p995_p4 = scmp.lt.u32.totalorder %s1327_s11, %s1381_s5 }
 0x25f   : > { %p996_p5 = scmp.lt.u32.totalorder %s994_s15, %s990_s12  ;;  %p998_p11 = scmp.lt.u32.totalorder %s990_s12, %s1327_s11 }
 0x260   : > { %p992_p6 = pnand %p991_p13, %p1395_p0 }
 0x261   : > { %p997_p8 = por %p996_p5, %p995_p4 }
 0x262   : > { %p993_p10 = pneg %p992_p6 }
 0x263   : > { %p999_p2 = por %p998_p11, %p997_p8 }
 0x265   : > { %p1000_p3 = pnand %p999_p2, %p993_p10 }
 0x267   : > { %1003 = shalt.err (!%p1000_p3)
}
 0x268   : > { %s1054_s28 = smov 128   ;;  %s1055_s9 = smov 8  }
 0x269   : > { %829 = dma.vmem_to_hbm [thread:$0]  (%p1395_p0), %s1329_s13, 2048, %s1327_s11, %s596_s22, %s1054_s28, %s1054_s28, %s1055_s9  }
 0x26a PF: > { %s624_s30 = sand.u32 1, %s1034_s18   ;;  %p1396_p7 = scmp.ne.s32.totalorder %s1386_s25, 0 }
 0x26b   : > { %p1397_p9 = scmp.ge.s32.totalorder %s1046_s21, 2  ;;  %s625_s17 = scalar_lea.sflag [#allocation4], %s624_s30 }
 0x26d   : > { %p843_p12 = pnand %p1397_p9, %p1396_p7 }
 0x26f   : > { %1029 = dma.done.wait (!%p843_p12), %s625_s17, 2048  }
 0x270   : > { %1031 = vsyncadd (!%p843_p12), %s625_s17, 4294965248  ;;  %p19_p1 = scmp.ge.s32.totalorder %s1202_s29, 4   ;;  %s1398_s18 = smov %s1038_s19 }
 0x271   : > { %s1399_s19 = smov %s1042_s20  ;;  %s1400_s20 = smov %s1218_s27 }
 0x272   : > { %s1401_s21 = smov %s1202_s29  ;;  %21 = sbr.rel (!%p19_p1) target bundleno = 6 (0x6), region = 93 }
 0x279   :  { %630 = vsyncpa [#allocation3], 1 }
 0x27a   :  { %632 = vsyncpa [#allocation3 + $0x1], 1 }
 0x27b   :  { %633 = vsyncpa [#allocation6], 1 }
 0x27c   :  { %634 = vsyncpa [#allocation4], 1 }
 0x27d   :  { %636 = vsyncpa [#allocation4 + $0x1], 1 }

</bundles_post_ra>
